<compile_context>
chip_gen: v5e
topology: v5e:2x2
jax: 0.10.0
libtpu: 0.0.40
codegen_flags: <defaults>
</compile_context>

<pallas_src>
import functools

import jax
import jax.numpy as jnp
from jax.experimental import pallas as pl
from jax.experimental.pallas import tpu as pltpu


_VMEM_LIMIT = 32 * 1024 * 1024      # comfortably inside v7x's 64 MiB per core


def _round_up(x, m):
    return (x + m - 1) // m * m


# ----------------------------------------------------------------------------
# pltpu.roll direction calibration (tiny one-off kernel, run eagerly).
# We need jnp.roll semantics; the shift sign is probed once and then baked
# statically into every kernel.  Building a kernel before calibration raises.
# ----------------------------------------------------------------------------

_ROLL_MATCHES_JNP = None


def _detect_roll_convention():
    global _ROLL_MATCHES_JNP
    if _ROLL_MATCHES_JNP is not None:
        return _ROLL_MATCHES_JNP

    def k(x_ref, o_ref):
        o_ref[...] = pltpu.roll(x_ref[...], 1, 0)

    x = jnp.arange(8 * 128, dtype=jnp.float32).reshape(8, 128)
    y = pl.pallas_call(
        k,
        out_shape=jax.ShapeDtypeStruct((8, 128), jnp.float32),
        compiler_params=pltpu.CompilerParams(vmem_limit_bytes=_VMEM_LIMIT),
    )(x)
    # jnp.roll convention: row 0 moves to row 1  ->  y[1, 0] == x[0, 0] == 0
    _ROLL_MATCHES_JNP = bool(jax.device_get(y[1, 0]) == 0.0)
    return _ROLL_MATCHES_JNP


def _roll_fwd():
    if _ROLL_MATCHES_JNP is None:
        raise RuntimeError(
            "pltpu.roll direction not calibrated; call init_params() or "
            "_detect_roll_convention() eagerly (outside jit) before tracing.")
    return _ROLL_MATCHES_JNP


def _roll_rows(v, jnp_shift, roll_fwd):
    """Equivalent of jnp.roll(v, jnp_shift, axis=0) inside a Pallas kernel."""
    n = v.shape[0]
    s = jnp_shift % n
    if s == 0:
        return v
    return pltpu.roll(v, s if roll_fwd else n - s, 0)


# ----------------------------------------------------------------------------
# Pallas kernels
# ----------------------------------------------------------------------------

def _make_stage_kernel(num_blocks, P8, roll_fwd):
    """`num_blocks` fused residual blocks on a format-R padded raster.

    refs = (mask, x, [w1, b1, a1, w2, b2, a2] * num_blocks, out)
      mask: (n, 1)  f32  1.0 at valid pixel rows, 0.0 at pad / garbage rows
      x:    (n, C)  bf16 format-R raster (zero pad rows), n = B * Hp * P8
      w*:   (9, C, C) bf16 tap-major 3x3 weights; b*/a*: (1, C) f32
      out:  (n, C)  bf16 format-R raster (same invariant as x)
    """
    def kernel(*refs):
        mask_ref, x_ref = refs[0], refs[1]
        w_refs = refs[2:2 + 6 * num_blocks]
        o_ref = refs[2 + 6 * num_blocks]

        mask = mask_ref[...]                          # (n, 1) f32
        x = x_ref[...]                                # (n, C) bf16 format R
        n = x.shape[0]

        def conv_prelu(v, w_ref, b_ref, a_ref):
            # PReLU(3x3 conv(v)) in f32, compact alignment (pixel (h,w) at row
            # h*P8+w).  All nine taps share the *unshifted* bf16 LHS; the tap
            # offsets are applied to the f32 MXU outputs with XLU rolls, so
            # there is no bf16<->f32 cast round-trip on the raster.
            cout = w_ref.shape[2]
            accs = [jnp.zeros((n, cout), jnp.float32) for _ in range(3)]
            for dy in range(3):
                for dx in range(3):
                    g = jnp.dot(v, w_ref[3 * dy + dx],
                                preferred_element_type=jnp.float32)
                    accs[dx] = accs[dx] + _roll_rows(g, -dy * P8, roll_fwd)
            acc = (accs[0]
                   + _roll_rows(accs[1], -1, roll_fwd)
                   + _roll_rows(accs[2], -2, roll_fwd))
            acc = acc + b_ref[...]                    # (1, Cout) broadcast
            return jnp.where(acc >= 0.0, acc, a_ref[...] * acc)

        for blk in range(num_blocks):
            w1, b1, a1, w2, b2, a2 = w_refs[6 * blk:6 * blk + 6]
            y1 = conv_prelu(x, w1, b1, a1)                       # f32 compact
            # re-raster: compact row h*P8+w -> format-R row (h+1)*P8+(w+1),
            # zero the pad/garbage rows so conv2 sees a proper zero border.
            y1r = (mask * _roll_rows(y1, P8 + 1, roll_fwd)).astype(jnp.bfloat16)
            y2 = conv_prelu(y1r, w2, b2, a2)                     # f32 compact
            outr = mask * _roll_rows(y2, P8 + 1, roll_fwd) + x.astype(jnp.float32)
            x = outr.astype(jnp.bfloat16)                        # format R
        o_ref[...] = x
    return kernel


def _conv_gemm_kernel(x_ref, w_ref, b_ref, a_ref, o_ref):
    """Fused conv-as-GEMM (stride-2 layers): PReLU(patches @ W + b)."""
    acc = jnp.dot(x_ref[...], w_ref[...], preferred_element_type=jnp.float32)
    acc = acc + b_ref[...]
    out = jnp.where(acc >= 0.0, acc, a_ref[...] * acc)
    o_ref[...] = out.astype(o_ref.dtype)


def _make_linear_kernel(has_bias):
    """N x K tiled matmul with f32 accumulator scratch, optional bias."""
    def kernel(*refs):
        if has_bias:
            x_ref, w_ref, b_ref, o_ref, acc_ref = refs
        else:
            x_ref, w_ref, o_ref, acc_ref = refs
        k = pl.program_id(1)

        @pl.when(k == 0)
        def _():
            acc_ref[...] = jnp.zeros_like(acc_ref)

        acc_ref[...] += jnp.dot(x_ref[...], w_ref[...],
                                preferred_element_type=jnp.float32)

        @pl.when(k == pl.num_programs(1) - 1)
        def _():
            r = acc_ref[...]
            if has_bias:
                r = r + b_ref[...]
            o_ref[...] = r.astype(o_ref.dtype)
    return kernel


# ----------------------------------------------------------------------------
# Wrappers
# ----------------------------------------------------------------------------

def _to_raster(x_nhwc):
    """Pad an NHWC activation into format R: 1-pixel zero border plus extra
    zero columns so the padded width is a multiple of 8 sublanes."""
    B, H, W, C = x_nhwc.shape
    P8 = _round_up(W + 2, 8)
    return jnp.pad(x_nhwc, ((0, 0), (1, 1), (1, P8 - W - 1), (0, 0)))


def _valid_mask(H, W, Hp, P8, B):
    r = jnp.arange(Hp, dtype=jnp.int32)[:, None]
    c = jnp.arange(P8, dtype=jnp.int32)[None, :]
    m = ((r >= 1) & (r <= H) & (c >= 1) & (c <= W)).astype(jnp.float32)
    return jnp.tile(m.reshape(Hp * P8, 1), (B, 1))


def conv3x3_s2(xR, H, W, p):
    """3x3 / stride-2 / pad-1 conv + bias + PReLU from a format-R raster.

    The raster is already zero-padded, so the im2col is just 9 strided slices
    (no extra jnp.pad); the GEMM + bias + PReLU is one fused Pallas kernel
    with the batch folded into M.
    """
    B, Hp, P8, Cin = xR.shape
    Cout = p["w"].shape[-1]
    Ho = (H - 1) // 2 + 1
    Wo = (W - 1) // 2 + 1
    # TODO(synk): the 9-tap gather could move inside the kernel (strided
    # in-VMEM slices) to drop the remaining XLA concat glue on these 4 layers.
    cols = [xR[:, dy:dy + 2 * Ho - 1:2, dx:dx + 2 * Wo - 1:2, :]
            for dy in range(3) for dx in range(3)]
    patches = jnp.concatenate(cols, axis=-1).reshape(B * Ho * Wo, 9 * Cin)
    out = pl.pallas_call(
        _conv_gemm_kernel,
        out_shape=jax.ShapeDtypeStruct((B * Ho * Wo, Cout), jnp.bfloat16),
        compiler_params=pltpu.CompilerParams(vmem_limit_bytes=_VMEM_LIMIT),
    )(patches, p["w"].reshape(9 * Cin, Cout), p["b"], p["a"])
    return out.reshape(B, Ho, Wo, Cout)


def res_stage(xR, H, W, blocks):
    """Apply len(blocks) residual blocks (conv+PReLU, conv+PReLU, +x) fused in
    a single Pallas kernel; activations stay in VMEM between the convs."""
    B, Hp, P8, C = xR.shape
    n = Hp * P8
    mask = _valid_mask(H, W, Hp, P8, B)
    args = [mask, xR.reshape(B * n, C)]
    for pa, pb in blocks:
        args += [pa["w"], pa["b"], pa["a"], pb["w"], pb["b"], pb["a"]]
    out = pl.pallas_call(
        _make_stage_kernel(len(blocks), P8, _roll_fwd()),
        out_shape=jax.ShapeDtypeStruct((B * n, C), jnp.bfloat16),
        compiler_params=pltpu.CompilerParams(vmem_limit_bytes=_VMEM_LIMIT),
    )(*args)
    return out.reshape(B, Hp, P8, C)


def linear(x, w, b=None, *, tn=None, tk=None, out_dtype=None):
    """x @ w (+ b), K-accumulating and N-parallel tiled Pallas matmul."""
    M, K = x.shape
    N = w.shape[1]
    out_dtype = x.dtype if out_dtype is None else out_dtype
    tn = N if (tn is None or N % tn != 0) else tn
    tk = K if (tk is None or K % tk != 0) else tk
    grid = (N // tn, K // tk)

    in_specs = [pl.BlockSpec((M, tk), lambda j, k: (0, k)),
                pl.BlockSpec((tk, tn), lambda j, k: (k, j))]
    args = [x, w]
    if b is not None:
        in_specs.append(pl.BlockSpec((1, tn), lambda j, k: (0, j)))
        args.append(b.reshape(1, N).astype(jnp.float32))

    return pl.pallas_call(
        _make_linear_kernel(b is not None),
        out_shape=jax.ShapeDtypeStruct((M, N), out_dtype),
        grid=grid,
        in_specs=in_specs,
        out_specs=pl.BlockSpec((M, tn), lambda j, k: (0, j)),
        scratch_shapes=[pltpu.VMEM((M, tn), jnp.float32)],
        compiler_params=pltpu.CompilerParams(
            dimension_semantics=("parallel", "arbitrary"),
            vmem_limit_bytes=_VMEM_LIMIT),
    )(*args)


# ----------------------------------------------------------------------------
# Parameters (deterministic synthetic init)
# ----------------------------------------------------------------------------

_CONV_SPECS = [
    ("conv1_1", 3, 64), ("conv1_2", 64, 64), ("conv1_3", 64, 64),
    ("conv2_1", 64, 128), ("conv2_2", 128, 128), ("conv2_3", 128, 128),
    ("conv2_4", 128, 128), ("conv2_5", 128, 128),
    ("conv3_1", 128, 256), ("conv3_2", 256, 256), ("conv3_3", 256, 256),
    ("conv3_4", 256, 256), ("conv3_5", 256, 256), ("conv3_6", 256, 256),
    ("conv3_7", 256, 256), ("conv3_8", 256, 256), ("conv3_9", 256, 256),
    ("conv4_1", 256, 512), ("conv4_2", 512, 512), ("conv4_3", 512, 512),
]


def init_params(key, classnum=128):
    _detect_roll_convention()        # must run eagerly before any tracing
    params = {}
    keys = jax.random.split(key, len(_CONV_SPECS) + 2)
    for (name, cin, cout), k in zip(_CONV_SPECS, keys[:len(_CONV_SPECS)]):
        std = (2.0 / (9 * cin)) ** 0.5
        params[name] = {
            "w": (jax.random.normal(k, (9, cin, cout), jnp.float32)
                  * std).astype(jnp.bfloat16),
            "b": jnp.zeros((1, cout), jnp.float32),
            "a": jnp.full((1, cout), 0.25, jnp.float32),   # PReLU default init
        }
    # fc5 weight rows are stored in NHWC-flatten order (the torch weight.T
    # with rows permuted from CHW order) so the forward needs no transpose.
    fc_in = 512 * 7 * 6
    params["fc5_w"] = (jax.random.normal(keys[-2], (fc_in, 512), jnp.float32)
                       * (1.0 / fc_in ** 0.5)).astype(jnp.bfloat16)
    params["fc5_b"] = jnp.zeros((512,), jnp.float32)
    params["fc6_w"] = (jax.random.normal(keys[-1], (512, classnum), jnp.float32)
                       * (1.0 / 512 ** 0.5)).astype(jnp.bfloat16)
    return params


# ----------------------------------------------------------------------------
# sphere20a forward
# ----------------------------------------------------------------------------

_STAGES = (
    ("conv1_1", (("conv1_2", "conv1_3"),)),
    ("conv2_1", (("conv2_2", "conv2_3"), ("conv2_4", "conv2_5"))),
    ("conv3_1", (("conv3_2", "conv3_3"), ("conv3_4", "conv3_5"),
                 ("conv3_6", "conv3_7"), ("conv3_8", "conv3_9"))),
    ("conv4_1", (("conv4_2", "conv4_3"),)),
)


def sphere20a_forward(params, x_nchw, y=None, feature=False):
    # y is accepted (matching the torch signature) but unused by the forward.
    x = jnp.transpose(x_nchw, (0, 2, 3, 1)).astype(jnp.bfloat16)  # NCHW -> NHWC
    B, h, w, _ = x.shape

    xR = _to_raster(x)                                   # padded image raster
    for s2_name, block_names in _STAGES:
        yc = conv3x3_s2(xR, h, w, params[s2_name])       # stride-2 conv+PReLU
        h, w = yc.shape[1], yc.shape[2]
        xR = _to_raster(yc)
        xR = res_stage(xR, h, w,
                       [(params[a], params[b]) for a, b in block_names])

    # extract valid pixels; fc5_w rows are in this NHWC-flatten order.
    feats = xR[:, 1:1 + h, 1:1 + w, :].reshape(B, h * w * xR.shape[-1])

    f = linear(feats, params["fc5_w"], params["fc5_b"],
               tn=512, tk=10752, out_dtype=jnp.float32)
    if feature:
        return f

    # LSoftmaxLinear: both train and eval branches return input @ weight.
    # TODO(synk): the LSoftmax margin terms (logit3 / ls_target) are computed
    # but never returned by the reference module, so they are not reproduced.
    return linear(f, params["fc6_w"], None, out_dtype=jnp.float32)


# ----------------------------------------------------------------------------
# Demo
# ----------------------------------------------------------------------------

if __name__ == "__main__":
    _detect_roll_convention()     # calibrate pltpu.roll direction before jit

    key = jax.random.PRNGKey(0)
    kp, kx, ky = jax.random.split(key, 3)

    classnum = 128                # small classnum (reference default is 10574)
    batch = 2
    params = init_params(kp, classnum=classnum)

    # The architecture requires 3 x 112 x 96 input so that fc5 sees 512*7*6.
    x = jax.random.normal(kx, (batch, 3, 112, 96), jnp.float32)
    y = jax.random.randint(ky, (batch,), 0, classnum)   # unused, as in torch

    fwd = jax.jit(functools.partial(sphere20a_forward, feature=False))
    out = jax.block_until_ready(fwd(params, x, y))
    assert out.shape == (batch, classnum), out.shape
    assert out.dtype == jnp.float32
    assert bool(jnp.all(jnp.isfinite(out)))

    print("KERNEL_OK")
</pallas_src>

<mosaic_0001>
module attributes {stable_mosaic.version = 11 : i64} {
  func.func @k(%arg0: memref<8x128xf32, #tpu.memory_space<vmem>>, %arg1: memref<8x128xf32, #tpu.memory_space<vmem>>) attributes {dimension_semantics = [], scalar_prefetch = 0 : i64, scratch_operands = 0 : i64, tpu.core_type = #tpu.core_type<tc>} {
    %c0 = arith.constant 0 : index
    %c0_0 = arith.constant 0 : index
    %0 = vector.load %arg0[%c0, %c0_0] : memref<8x128xf32, #tpu.memory_space<vmem>>, vector<8x128xf32>
    %c1_i32 = arith.constant 1 : i32
    %1 = tpu.dynamic_rotate %0 by %c1_i32 dim 0 : vector<8x128xf32>, i32 -> vector<8x128xf32>
    %c0_1 = arith.constant 0 : index
    %c0_2 = arith.constant 0 : index
    %2 = vector.load %arg1[%c0_1, %c0_2] : memref<8x128xf32, #tpu.memory_space<vmem>>, vector<8x128xf32>
    tpu.vector_store %arg1[%c0_1, %c0_2], %1 {strides = array<i32>} : memref<8x128xf32, #tpu.memory_space<vmem>>, vector<8x128xf32>,
    return
  }
}

</mosaic_0001>

<bundles_post_ra>
// kernel: tpu_custom_call.1
= control target key start
LH: loop header
LB: loop body
LE: loop exit
PB: predicated region body
PF: predicated region fallthrough
CT: control target
= control target key end

     0   :  { %6 = vsyncpa [#allocation3], 0  ;;  %s115_s0 = inlined_call_operand.hbm [shape: f32[8,128], index: 0, kind: input, shape index: {}]   ;;  %s116_s1 = inlined_call_operand.hbm [shape: f32[8,128], index: 1, kind: output, shape index: {}]  }
   0x1   :  { %7 = vsyncpa [#allocation4], 0  ;;  %s13_s8 = sshll.u32 %s115_s0, 4  ;;  %s97_s9 = smov [#allocation2]   ;;  %s14_s8 = int_to_ptr.hbm [resolvable:$true] %s13_s8 }
   0x2   :  { %s15_s10 = sshll.u32 %s97_s9, 4  ;;  %s16_s10 = int_to_ptr.vmem [resolvable:$true] %s15_s10 }
   0x3   :  { %18 = dma.hbm_to_vmem [thread:$0]  %s14_s8, 128, %s16_s10, [#allocation3]  }
   0x4   :  { %93 = dma.done.wait [#allocation3], 128  }
   0x5   :  { %94 = vsyncadd [#allocation3], 4294967168  ;;  %s98_s11 = smov [#allocation5]   ;;  %s33_s15 = sshll.u32 %s116_s1, 4  ;;  %v23_v0 = vld [vmem:[#allocation2] sm:$0xff]  ;;  %s34_s15 = int_to_ptr.hbm [resolvable:$true] %s33_s15 }
   0x6   :  { %s31_s12 = sshll.u32 %s98_s11, 4  ;;  %v24_v1 = vrot.slane %v23_v0, 7  ;;  %s32_s12 = int_to_ptr.vmem [resolvable:$true] %s31_s12 }
   0x8   :  { %25 = vst [vmem:[#allocation5] sm:$0xff] %v24_v1 }
   0x9   :  { %36 = dma.vmem_to_hbm [thread:$0]  %s32_s12, 128, %s34_s15, [#allocation4]  }
   0xa   :  { %95 = dma.done.wait [#allocation4], 128  }
   0xb   :  { %96 = vsyncadd [#allocation4], 4294967168 }
   0xc   :  { %41 = vsyncpa [#allocation3], 1 }
   0xd   :  { %42 = vsyncpa [#allocation4], 1 }

</bundles_post_ra>
